<compile_context>
chip_gen: v7x
topology: tpu7x:2x2x1
jax: 0.10.0
libtpu: 0.0.40
codegen_flags: <defaults>
</compile_context>

<pallas_src>
import jax
import jax.numpy as jnp
from jax.experimental import pallas as pl
from jax.experimental.pallas import tpu as pltpu

LANE = 128


def _round_up(n, m):
    return ((n + m - 1) // m) * m


def _mlp_kernel(x_ref,
                w1_ref, b1_ref,
                w2_ref, b2_ref,
                w3_ref, b3_ref,
                w4_ref, b4_ref,
                w5_ref, b5_ref,
                o_ref):
    # x / weights are bf16; every matmul accumulates in f32 on the MXU and
    # the bias-add / ReLU epilogue stays in f32.
    bf16 = jnp.bfloat16

    h = jnp.dot(x_ref[...], w1_ref[...],
                preferred_element_type=jnp.float32) + b1_ref[...]
    h = jnp.maximum(h, 0.0)                       # relu(fc1); dropout = identity

    h = jnp.dot(h.astype(bf16), w2_ref[...],
                preferred_element_type=jnp.float32) + b2_ref[...]
    h = jnp.maximum(h, 0.0)                       # relu(fc2)

    h = jnp.dot(h.astype(bf16), w3_ref[...],
                preferred_element_type=jnp.float32) + b3_ref[...]
    h = jnp.maximum(h, 0.0)                       # relu(fc3)

    h = jnp.dot(h.astype(bf16), w4_ref[...],
                preferred_element_type=jnp.float32) + b4_ref[...]
    h = jnp.maximum(h, 0.0)                       # relu(fc4)

    h = jnp.dot(h.astype(bf16), w5_ref[...],
                preferred_element_type=jnp.float32) + b5_ref[...]
    o_ref[...] = h.astype(o_ref.dtype)            # fc5 (no activation), bf16 store


def prepare_params(params):
    """One-time model-load prep: pad all layer dims to the 128-lane width and
    cast weights to bf16 (biases stay f32).  Keeps the per-call path free of
    pad/cast ops and lets XLA keep the padded bf16 weights resident in HBM."""
    in_dim = params["w1"].shape[0]
    out_dim = params["w5"].shape[1]

    dims = [_round_up(in_dim, LANE)]              # 427 -> 512
    for i in range(1, 6):
        dims.append(_round_up(params[f"w{i}"].shape[1], LANE))

    def pad2(a, rows, cols, dtype):
        a = jnp.pad(a, ((0, rows - a.shape[0]), (0, cols - a.shape[1])))
        return a.astype(dtype)

    ws, bs = [], []
    for i in range(1, 6):
        ws.append(pad2(params[f"w{i}"], dims[i - 1], dims[i], jnp.bfloat16))
        bs.append(pad2(params[f"b{i}"], 1, dims[i], jnp.float32))

    return {
        "ws": tuple(ws),
        "bs": tuple(bs),
        "dims": tuple(dims),
        "in_dim": in_dim,
        "out_dim": out_dim,
    }


def _choose_tm(B):
    """Batch tile size.

    Small batches: one 16-row-aligned tile (bf16 packs 16 rows per vreg
    sublane group; single grid step = minimal launch overhead).
    Large batches: >=512-row tiles (per-grid-step overhead ~0.35us, 512+
    rows ~85% of the HBM roofline) while keeping >=2 grid steps so the
    "parallel" axis spans both v7x TensorCores.  Working set at TM=1024 is
    only a few MiB, under every generation's scoped-VMEM default (incl. v7x).
    """
    b16 = _round_up(max(B, 1), 16)
    if b16 < 1024:
        return b16
    if b16 < 4096:
        return 512
    return 1024


def net_forward(x, prepared):
    """x: (B, 427) float32.  prepared: output of prepare_params()."""
    B, K = x.shape
    dims = prepared["dims"]
    ws, bs = prepared["ws"], prepared["bs"]
    out_dim = prepared["out_dim"]
    assert K == prepared["in_dim"]

    TM = _choose_tm(B)
    B_pad = _round_up(B, TM)

    # Only x needs per-call padding / bf16 cast (weights were prepped once).
    x_p = jnp.pad(x, ((0, B_pad - B), (0, dims[0] - K))).astype(jnp.bfloat16)

    grid = (B_pad // TM,)

    const0 = lambda i: (0, 0)
    # If an xprof trace on v5e shows exposed DMA waits on the x stream, add
    # pipeline_mode=pl.Buffered(3) to this first BlockSpec.
    in_specs = [pl.BlockSpec((TM, dims[0]), lambda i: (i, 0))]
    operands = [x_p]
    for w, b in zip(ws, bs):
        in_specs.append(pl.BlockSpec(w.shape, const0))   # resident weights
        in_specs.append(pl.BlockSpec(b.shape, const0))   # resident biases
        operands.extend([w, b])

    # Advisory cost estimate so XLA schedules the pad/slice around the call.
    flops = 2 * B_pad * sum(dims[i] * dims[i + 1] for i in range(5))
    bytes_accessed = (
        B_pad * dims[0] * 2                       # bf16 x in
        + B_pad * dims[5] * 2                     # bf16 out
        + sum(int(w.size) * 2 for w in ws)        # bf16 weights
        + sum(int(b.size) * 4 for b in bs)        # f32 biases
    )

    out_p = pl.pallas_call(
        _mlp_kernel,
        out_shape=jax.ShapeDtypeStruct((B_pad, dims[5]), jnp.bfloat16),
        grid=grid,
        in_specs=in_specs,
        out_specs=pl.BlockSpec((TM, dims[5]), lambda i: (i, 0)),
        compiler_params=pltpu.CompilerParams(
            dimension_semantics=("parallel",)),
        cost_estimate=pl.CostEstimate(
            flops=flops, transcendentals=0, bytes_accessed=bytes_accessed),
    )(*operands)

    return out_p[:B, :out_dim].astype(jnp.float32)


def init_params(key, hidden_dim):
    """Deterministic synthetic parameters matching Net(hidden_dim)."""
    dims = [
        (427, hidden_dim),             # fc1
        (hidden_dim, hidden_dim * 2),  # fc2
        (hidden_dim * 2, hidden_dim),  # fc3
        (hidden_dim, 32),              # fc4
        (32, 3),                       # fc5
    ]
    params = {}
    for i, (fan_in, fan_out) in enumerate(dims, start=1):
        key, kw, kb = jax.random.split(key, 3)
        bound = 1.0 / (fan_in ** 0.5)              # PyTorch Linear default init range
        params[f"w{i}"] = jax.random.uniform(
            kw, (fan_in, fan_out), jnp.float32, -bound, bound)
        params[f"b{i}"] = jax.random.uniform(
            kb, (1, fan_out), jnp.float32, -bound, bound)
    return params


def _reference(x, p):
    """Pure-JAX reference using the same bf16 operand quantization (and final
    bf16 rounding) as the kernel."""
    bf = lambda a: a.astype(jnp.bfloat16).astype(jnp.float32)
    h = jax.nn.relu(bf(x) @ bf(p["w1"]) + p["b1"])
    h = jax.nn.relu(bf(h) @ bf(p["w2"]) + p["b2"])
    h = jax.nn.relu(bf(h) @ bf(p["w3"]) + p["b3"])
    h = jax.nn.relu(bf(h) @ bf(p["w4"]) + p["b4"])
    out = bf(h) @ bf(p["w5"]) + p["b5"]
    return out.astype(jnp.bfloat16).astype(jnp.float32)


if __name__ == "__main__":
    key = jax.random.PRNGKey(0)
    hidden_dim = 32
    batch = 8

    kx, kp = jax.random.split(key)
    x = jax.random.normal(kx, (batch, 427), jnp.float32)
    params = init_params(kp, hidden_dim)
    prepared = prepare_params(params)              # one-time, off the call path

    out = net_forward(x, prepared)
    out = jax.block_until_ready(out)

    ref = _reference(x, params)
    assert out.shape == (batch, 3)
    # Kernel output is bf16-rounded; allow ~1 bf16 ulp of slack on top of
    # MXU-vs-XLA accumulation-order differences.
    assert jnp.allclose(out, ref, atol=1e-2, rtol=1e-2), "mismatch vs reference"

    print("KERNEL_OK")
</pallas_src>

<mosaic_0001>
module attributes {stable_mosaic.version = 11 : i64} {
  func.func @_mlp_kernel(%arg0: i32, %arg1: memref<16x512xbf16, #tpu.memory_space<vmem>>, %arg2: memref<512x128xbf16, #tpu.memory_space<vmem>>, %arg3: memref<1x128xf32, #tpu.memory_space<vmem>>, %arg4: memref<128x128xbf16, #tpu.memory_space<vmem>>, %arg5: memref<1x128xf32, #tpu.memory_space<vmem>>, %arg6: memref<128x128xbf16, #tpu.memory_space<vmem>>, %arg7: memref<1x128xf32, #tpu.memory_space<vmem>>, %arg8: memref<128x128xbf16, #tpu.memory_space<vmem>>, %arg9: memref<1x128xf32, #tpu.memory_space<vmem>>, %arg10: memref<128x128xbf16, #tpu.memory_space<vmem>>, %arg11: memref<1x128xf32, #tpu.memory_space<vmem>>, %arg12: memref<16x128xbf16, #tpu.memory_space<vmem>>) attributes {dimension_semantics = [#tpu.dimension_semantics<parallel>], iteration_bounds = array<i64: 1>, scalar_prefetch = 0 : i64, scratch_operands = 0 : i64, tpu.core_type = #tpu.core_type<tc>, window_params = [{transform_indices = @transform_0, window_bounds = array<i64: 16, 512>}, {pipeline_mode = #tpu.pipeline_mode<synchronous>, transform_indices = @transform_1, window_bounds = array<i64: 512, 128>}, {pipeline_mode = #tpu.pipeline_mode<synchronous>, transform_indices = @transform_2, window_bounds = array<i64: 1, 128>}, {pipeline_mode = #tpu.pipeline_mode<synchronous>, transform_indices = @transform_3, window_bounds = array<i64: 128, 128>}, {pipeline_mode = #tpu.pipeline_mode<synchronous>, transform_indices = @transform_4, window_bounds = array<i64: 1, 128>}, {pipeline_mode = #tpu.pipeline_mode<synchronous>, transform_indices = @transform_5, window_bounds = array<i64: 128, 128>}, {pipeline_mode = #tpu.pipeline_mode<synchronous>, transform_indices = @transform_6, window_bounds = array<i64: 1, 128>}, {pipeline_mode = #tpu.pipeline_mode<synchronous>, transform_indices = @transform_7, window_bounds = array<i64: 128, 128>}, {pipeline_mode = #tpu.pipeline_mode<synchronous>, transform_indices = @transform_8, window_bounds = array<i64: 1, 128>}, {pipeline_mode = #tpu.pipeline_mode<synchronous>, transform_indices = @transform_9, window_bounds = array<i64: 128, 128>}, {pipeline_mode = #tpu.pipeline_mode<synchronous>, transform_indices = @transform_10, window_bounds = array<i64: 1, 128>}, {transform_indices = @transform_11, window_bounds = array<i64: 16, 128>}]} {
    %c0 = arith.constant 0 : index
    %c0_0 = arith.constant 0 : index
    %0 = vector.load %arg1[%c0, %c0_0] : memref<16x512xbf16, #tpu.memory_space<vmem>>, vector<16x512xbf16>
    %c0_1 = arith.constant 0 : index
    %c0_2 = arith.constant 0 : index
    %1 = vector.load %arg2[%c0_1, %c0_2] : memref<512x128xbf16, #tpu.memory_space<vmem>>, vector<512x128xbf16>
    %cst = arith.constant dense<0.000000e+00> : vector<16x128xf32>
    %2 = tpu.matmul %0, %1, %cst {dimension_numbers = #tpu.dot_dimension_numbers<[1], [0], [0], [1], [0, 0, 1, 1], [], []>} : vector<16x512xbf16>, vector<512x128xbf16>, vector<16x128xf32> -> vector<16x128xf32>
    %c0_3 = arith.constant 0 : index
    %c0_4 = arith.constant 0 : index
    %3 = vector.load %arg3[%c0_3, %c0_4] : memref<1x128xf32, #tpu.memory_space<vmem>>, vector<1x128xf32>
    %4 = vector.broadcast %3 : vector<1x128xf32> to vector<16x128xf32>
    %5 = arith.addf %2, %4 : vector<16x128xf32>
    %cst_5 = arith.constant 0.000000e+00 : f32
    %6 = vector.broadcast %cst_5 : f32 to vector<16x128xf32>
    %7 = arith.maximumf %5, %6 : vector<16x128xf32>
    %8 = arith.truncf %7 : vector<16x128xf32> to vector<16x128xbf16>
    %c0_6 = arith.constant 0 : index
    %c0_7 = arith.constant 0 : index
    %9 = vector.load %arg4[%c0_6, %c0_7] : memref<128x128xbf16, #tpu.memory_space<vmem>>, vector<128x128xbf16>
    %cst_8 = arith.constant dense<0.000000e+00> : vector<16x128xf32>
    %10 = tpu.matmul %8, %9, %cst_8 {dimension_numbers = #tpu.dot_dimension_numbers<[1], [0], [0], [1], [0, 0, 1, 1], [], []>} : vector<16x128xbf16>, vector<128x128xbf16>, vector<16x128xf32> -> vector<16x128xf32>
    %c0_9 = arith.constant 0 : index
    %c0_10 = arith.constant 0 : index
    %11 = vector.load %arg5[%c0_9, %c0_10] : memref<1x128xf32, #tpu.memory_space<vmem>>, vector<1x128xf32>
    %12 = vector.broadcast %11 : vector<1x128xf32> to vector<16x128xf32>
    %13 = arith.addf %10, %12 : vector<16x128xf32>
    %cst_11 = arith.constant 0.000000e+00 : f32
    %14 = vector.broadcast %cst_11 : f32 to vector<16x128xf32>
    %15 = arith.maximumf %13, %14 : vector<16x128xf32>
    %16 = arith.truncf %15 : vector<16x128xf32> to vector<16x128xbf16>
    %c0_12 = arith.constant 0 : index
    %c0_13 = arith.constant 0 : index
    %17 = vector.load %arg6[%c0_12, %c0_13] : memref<128x128xbf16, #tpu.memory_space<vmem>>, vector<128x128xbf16>
    %cst_14 = arith.constant dense<0.000000e+00> : vector<16x128xf32>
    %18 = tpu.matmul %16, %17, %cst_14 {dimension_numbers = #tpu.dot_dimension_numbers<[1], [0], [0], [1], [0, 0, 1, 1], [], []>} : vector<16x128xbf16>, vector<128x128xbf16>, vector<16x128xf32> -> vector<16x128xf32>
    %c0_15 = arith.constant 0 : index
    %c0_16 = arith.constant 0 : index
    %19 = vector.load %arg7[%c0_15, %c0_16] : memref<1x128xf32, #tpu.memory_space<vmem>>, vector<1x128xf32>
    %20 = vector.broadcast %19 : vector<1x128xf32> to vector<16x128xf32>
    %21 = arith.addf %18, %20 : vector<16x128xf32>
    %cst_17 = arith.constant 0.000000e+00 : f32
    %22 = vector.broadcast %cst_17 : f32 to vector<16x128xf32>
    %23 = arith.maximumf %21, %22 : vector<16x128xf32>
    %24 = arith.truncf %23 : vector<16x128xf32> to vector<16x128xbf16>
    %c0_18 = arith.constant 0 : index
    %c0_19 = arith.constant 0 : index
    %25 = vector.load %arg8[%c0_18, %c0_19] : memref<128x128xbf16, #tpu.memory_space<vmem>>, vector<128x128xbf16>
    %cst_20 = arith.constant dense<0.000000e+00> : vector<16x128xf32>
    %26 = tpu.matmul %24, %25, %cst_20 {dimension_numbers = #tpu.dot_dimension_numbers<[1], [0], [0], [1], [0, 0, 1, 1], [], []>} : vector<16x128xbf16>, vector<128x128xbf16>, vector<16x128xf32> -> vector<16x128xf32>
    %c0_21 = arith.constant 0 : index
    %c0_22 = arith.constant 0 : index
    %27 = vector.load %arg9[%c0_21, %c0_22] : memref<1x128xf32, #tpu.memory_space<vmem>>, vector<1x128xf32>
    %28 = vector.broadcast %27 : vector<1x128xf32> to vector<16x128xf32>
    %29 = arith.addf %26, %28 : vector<16x128xf32>
    %cst_23 = arith.constant 0.000000e+00 : f32
    %30 = vector.broadcast %cst_23 : f32 to vector<16x128xf32>
    %31 = arith.maximumf %29, %30 : vector<16x128xf32>
    %32 = arith.truncf %31 : vector<16x128xf32> to vector<16x128xbf16>
    %c0_24 = arith.constant 0 : index
    %c0_25 = arith.constant 0 : index
    %33 = vector.load %arg10[%c0_24, %c0_25] : memref<128x128xbf16, #tpu.memory_space<vmem>>, vector<128x128xbf16>
    %cst_26 = arith.constant dense<0.000000e+00> : vector<16x128xf32>
    %34 = tpu.matmul %32, %33, %cst_26 {dimension_numbers = #tpu.dot_dimension_numbers<[1], [0], [0], [1], [0, 0, 1, 1], [], []>} : vector<16x128xbf16>, vector<128x128xbf16>, vector<16x128xf32> -> vector<16x128xf32>
    %c0_27 = arith.constant 0 : index
    %c0_28 = arith.constant 0 : index
    %35 = vector.load %arg11[%c0_27, %c0_28] : memref<1x128xf32, #tpu.memory_space<vmem>>, vector<1x128xf32>
    %36 = vector.broadcast %35 : vector<1x128xf32> to vector<16x128xf32>
    %37 = arith.addf %34, %36 : vector<16x128xf32>
    %38 = arith.truncf %37 : vector<16x128xf32> to vector<16x128xbf16>
    %c0_29 = arith.constant 0 : index
    %c0_30 = arith.constant 0 : index
    %39 = vector.load %arg12[%c0_29, %c0_30] : memref<16x128xbf16, #tpu.memory_space<vmem>>, vector<16x128xbf16>
    tpu.vector_store %arg12[%c0_29, %c0_30], %38 {strides = array<i32>} : memref<16x128xbf16, #tpu.memory_space<vmem>>, vector<16x128xbf16>,
    return
  }
  func.func @transform_0(%arg0: i32) -> (i32, i32) {
    %c0_i32 = arith.constant 0 : i32
    %c0_i32_0 = arith.constant 0 : i32
    return %arg0, %c0_i32 : i32, i32
  }
  func.func @transform_1(%arg0: i32) -> (i32, i32) {
    %c0_i32 = arith.constant 0 : i32
    %c0_i32_0 = arith.constant 0 : i32
    %c0_i32_1 = arith.constant 0 : i32
    return %c0_i32, %c0_i32_0 : i32, i32
  }
  func.func @transform_2(%arg0: i32) -> (i32, i32) {
    %c0_i32 = arith.constant 0 : i32
    %c0_i32_0 = arith.constant 0 : i32
    %c0_i32_1 = arith.constant 0 : i32
    return %c0_i32, %c0_i32_0 : i32, i32
  }
  func.func @transform_3(%arg0: i32) -> (i32, i32) {
    %c0_i32 = arith.constant 0 : i32
    %c0_i32_0 = arith.constant 0 : i32
    %c0_i32_1 = arith.constant 0 : i32
    return %c0_i32, %c0_i32_0 : i32, i32
  }
  func.func @transform_4(%arg0: i32) -> (i32, i32) {
    %c0_i32 = arith.constant 0 : i32
    %c0_i32_0 = arith.constant 0 : i32
    %c0_i32_1 = arith.constant 0 : i32
    return %c0_i32, %c0_i32_0 : i32, i32
  }
  func.func @transform_5(%arg0: i32) -> (i32, i32) {
    %c0_i32 = arith.constant 0 : i32
    %c0_i32_0 = arith.constant 0 : i32
    %c0_i32_1 = arith.constant 0 : i32
    return %c0_i32, %c0_i32_0 : i32, i32
  }
  func.func @transform_6(%arg0: i32) -> (i32, i32) {
    %c0_i32 = arith.constant 0 : i32
    %c0_i32_0 = arith.constant 0 : i32
    %c0_i32_1 = arith.constant 0 : i32
    return %c0_i32, %c0_i32_0 : i32, i32
  }
  func.func @transform_7(%arg0: i32) -> (i32, i32) {
    %c0_i32 = arith.constant 0 : i32
    %c0_i32_0 = arith.constant 0 : i32
    %c0_i32_1 = arith.constant 0 : i32
    return %c0_i32, %c0_i32_0 : i32, i32
  }
  func.func @transform_8(%arg0: i32) -> (i32, i32) {
    %c0_i32 = arith.constant 0 : i32
    %c0_i32_0 = arith.constant 0 : i32
    %c0_i32_1 = arith.constant 0 : i32
    return %c0_i32, %c0_i32_0 : i32, i32
  }
  func.func @transform_9(%arg0: i32) -> (i32, i32) {
    %c0_i32 = arith.constant 0 : i32
    %c0_i32_0 = arith.constant 0 : i32
    %c0_i32_1 = arith.constant 0 : i32
    return %c0_i32, %c0_i32_0 : i32, i32
  }
  func.func @transform_10(%arg0: i32) -> (i32, i32) {
    %c0_i32 = arith.constant 0 : i32
    %c0_i32_0 = arith.constant 0 : i32
    %c0_i32_1 = arith.constant 0 : i32
    return %c0_i32, %c0_i32_0 : i32, i32
  }
  func.func @transform_11(%arg0: i32) -> (i32, i32) {
    %c0_i32 = arith.constant 0 : i32
    %c0_i32_0 = arith.constant 0 : i32
    return %arg0, %c0_i32 : i32, i32
  }
}

</mosaic_0001>

<bundles_post_ra>
// kernel: tpu_custom_call.1
= control target key start
LH: loop header
LB: loop body
LE: loop exit
PB: predicated region body
PF: predicated region fallthrough
CT: control target
= control target key end

     0   :  { %16 = vsyncpa [#allocation3], 0  ;;  %s1700_s0 = inlined_call_operand.hbm [shape: bf16[16,512], index: 0, kind: input, shape index: {}]   ;;  %s1701_s1 = inlined_call_operand.hbm [shape: bf16[512,128], index: 1, kind: input, shape index: {}]   ;;  %s1702_s2 = inlined_call_operand.vmem [shape: f32[1,128], index: 2, kind: input, shape index: {}]   ;;  %s1703_s3 = inlined_call_operand.hbm [shape: bf16[128,128], index: 3, kind: input, shape index: {}]   ;;  %s1704_s4 = inlined_call_operand.vmem [shape: f32[1,128], index: 4, kind: input, shape index: {}]   ;;  %s1705_s5 = inlined_call_operand.hbm [shape: bf16[128,128], index: 5, kind: input, shape index: {}]   ;;  %s1706_s6 = inlined_call_operand.vmem [shape: f32[1,128], index: 6, kind: input, shape index: {}]   ;;  %s1707_s7 = inlined_call_operand.hbm [shape: bf16[128,128], index: 7, kind: input, shape index: {}]   ;;  %s1708_s8 = inlined_call_operand.vmem [shape: f32[1,128], index: 8, kind: input, shape index: {}]   ;;  %s1709_s9 = inlined_call_operand.hbm [shape: bf16[128,128], index: 9, kind: input, shape index: {}]   ;;  %s1710_s10 = inlined_call_operand.vmem [shape: f32[1,128], index: 10, kind: input, shape index: {}]   ;;  %s1711_s11 = inlined_call_operand.hbm [shape: bf16[16,128], index: 11, kind: output, shape index: {}]  }
   0x1   :  { %17 = vsyncpa [#allocation6], 0 }
   0x2   :  { %18 = vsyncpa [#allocation9], 0 }
   0x3   :  { %19 = vsyncpa [#allocation12], 0 }
   0x4   :  { %20 = vsyncpa [#allocation4], 0  ;;  %s1470_s17 = smov [#allocation5]   ;;  %s1306_s21 = scalar_lea.hbm %s1701_s1, 4096 }
   0x5   :  { %s38_s18 = sshll.u32 %s1470_s17, 4  ;;  %p1307_p0 = scmp.ne.s32.totalorder %s1701_s1, %s1306_s21  ;;  %s39_s18 = int_to_ptr.vmem [resolvable:$true] %s38_s18 }
   0x6   :  { %p1310_p1 = scmp.lt.u32.totalorder %s1306_s21, %s1701_s1 }
   0x8   :  { %p1312_p2 = pnand %p1310_p1, %p1307_p0 }
   0xa   :  { %1315 = shalt.err (!%p1312_p2)
}
   0xb   :  { %s1316_s26 = scalar_lea.vmem %s39_s18, 4096  ;;  %p1321_p4 = scmp.lt.s32.totalorder %s39_s18, %s39_s18 }
   0xc   :  { %p1317_p3 = scmp.ne.s32.totalorder %s39_s18, %s1316_s26  ;;  %p1322_p5 = scmp.lt.s32.totalorder %s1316_s26, %s1316_s26 }
   0xe   :  { %p1323_p6 = por %p1322_p5, %p1321_p4 }
  0x10   :  { %p1324_p7 = pnand %p1323_p6, %p1317_p3 }
  0x12   :  { %1327 = shalt.err (!%p1324_p7)
}
  0x13   :  { %s1471_s27 = smov 64   ;;  %s1472_s28 = smov 4  }
  0x14   :  { %44 = dma.hbm_to_vmem [thread:$0]  %s1701_s1, 4096, %s39_s18, [#allocation6], %s1471_s27, %s1471_s27, %s1472_s28  }
  0x15   :  { %s1473_s12 = smov [#allocation8]   ;;  %s1474_s14 = smov [#allocation2]  }
  0x16   :  { %s66_s13 = sshll.u32 %s1473_s12, 4  ;;  %s26_s15 = sshll.u32 %s1474_s14, 4  ;;  %s67_s13 = int_to_ptr.vmem [resolvable:$true] %s66_s13  ;;  %s27_s15 = int_to_ptr.vmem [resolvable:$true] %s26_s15 }
  0x17   :  { %s1328_s19 = scalar_lea.hbm %s1705_s5, 1024 }
  0x18   :  { %p1329_p8 = scmp.ne.s32.totalorder %s1705_s5, %s1328_s19  ;;  %p1332_p9 = scmp.lt.u32.totalorder %s1328_s19, %s1705_s5 }
  0x1a   :  { %p1334_p10 = pnand %p1332_p9, %p1329_p8 }
  0x1c   :  { %1337 = shalt.err (!%p1334_p10)
}
  0x1d   :  { %s1338_s1 = scalar_lea.vmem %s67_s13, 1024  ;;  %p1343_p12 = scmp.lt.s32.totalorder %s67_s13, %s67_s13 }
  0x1e   :  { %p1339_p11 = scmp.ne.s32.totalorder %s67_s13, %s1338_s1  ;;  %p1344_p13 = scmp.lt.s32.totalorder %s1338_s1, %s1338_s1 }
  0x20   :  { %p1345_p0 = por %p1344_p13, %p1343_p12 }
  0x22   :  { %p1346_p1 = pnand %p1345_p0, %p1339_p11 }
  0x24   :  { %1349 = shalt.err (!%p1346_p1)
}
  0x25   :  { %72 = dma.hbm_to_vmem [thread:$0]  %s1705_s5, 1024, %s67_s13, [#allocation9], %s1471_s27, %s1471_s27, %s1472_s28  }
  0x26   :  { %s1350_s29 = scalar_lea.hbm %s1700_s0, 512 }
  0x27   :  { %p1351_p2 = scmp.ne.s32.totalorder %s1700_s0, %s1350_s29  ;;  %p1354_p3 = scmp.lt.u32.totalorder %s1350_s29, %s1700_s0 }
  0x29   :  { %p1356_p4 = pnand %p1354_p3, %p1351_p2 }
  0x2b   :  { %1359 = shalt.err (!%p1356_p4)
}
  0x2c   :  { %s1360_s17 = scalar_lea.vmem %s27_s15, 512  ;;  %p1365_p6 = scmp.lt.s32.totalorder %s27_s15, %s27_s15 }
  0x2d   :  { %p1361_p5 = scmp.ne.s32.totalorder %s27_s15, %s1360_s17  ;;  %p1366_p7 = scmp.lt.s32.totalorder %s1360_s17, %s1360_s17 }
  0x2f   :  { %p1367_p8 = por %p1366_p7, %p1365_p6 }
  0x31   :  { %p1368_p9 = pnand %p1367_p8, %p1361_p5 }
  0x33   :  { %1371 = shalt.err (!%p1368_p9)
}
  0x34   :  { %s1475_s5 = smov 256   ;;  %s1476_s13 = smov 16  }
  0x35   :  { %32 = dma.hbm_to_vmem [thread:$0]  %s1700_s0, 512, %s27_s15, [#allocation3], %s1475_s5, %s1475_s5, %s1476_s13  }
  0x36   :  { %s1477_s21 = smov [#allocation7]   ;;  %s1478_s23 = smov [#allocation10]  }
  0x37   :  { %s52_s22 = sshll.u32 %s1477_s21, 4  ;;  %s80_s1 = sshll.u32 %s1478_s23, 4  ;;  %s53_s22 = int_to_ptr.vmem [resolvable:$true] %s52_s22  ;;  %s81_s1 = int_to_ptr.vmem [resolvable:$true] %s80_s1 }
  0x38   :  { %s1372_s25 = scalar_lea.hbm %s1703_s3, 1024 }
  0x39   :  { %p1373_p10 = scmp.ne.s32.totalorder %s1703_s3, %s1372_s25  ;;  %p1376_p11 = scmp.lt.u32.totalorder %s1372_s25, %s1703_s3 }
  0x3b   :  { %p1378_p12 = pnand %p1376_p11, %p1373_p10 }
  0x3d   :  { %1381 = shalt.err (!%p1378_p12)
}
  0x3e   :  { %s1382_s0 = scalar_lea.vmem %s53_s22, 1024  ;;  %p1387_p0 = scmp.lt.s32.totalorder %s53_s22, %s53_s22 }
  0x3f   :  { %p1383_p13 = scmp.ne.s32.totalorder %s53_s22, %s1382_s0  ;;  %p1388_p1 = scmp.lt.s32.totalorder %s1382_s0, %s1382_s0 }
  0x41   :  { %p1389_p2 = por %p1388_p1, %p1387_p0 }
  0x43   :  { %p1390_p3 = pnand %p1389_p2, %p1383_p13 }
  0x45   :  { %1393 = shalt.err (!%p1390_p3)
}
  0x46   :  { %58 = dma.hbm_to_vmem [thread:$0]  %s1703_s3, 1024, %s53_s22, [#allocation6], %s1471_s27, %s1471_s27, %s1472_s28  }
  0x47   :  { %s1394_s5 = scalar_lea.hbm %s1707_s7, 1024 }
  0x48   :  { %p1395_p4 = scmp.ne.s32.totalorder %s1707_s7, %s1394_s5  ;;  %p1398_p5 = scmp.lt.u32.totalorder %s1394_s5, %s1707_s7 }
  0x4a   :  { %p1400_p6 = pnand %p1398_p5, %p1395_p4 }
  0x4c   :  { %1403 = shalt.err (!%p1400_p6)
}
  0x4d   :  { %s1404_s23 = scalar_lea.vmem %s81_s1, 1024  ;;  %p1409_p8 = scmp.lt.s32.totalorder %s81_s1, %s81_s1 }
  0x4e   :  { %p1405_p7 = scmp.ne.s32.totalorder %s81_s1, %s1404_s23  ;;  %p1410_p9 = scmp.lt.s32.totalorder %s1404_s23, %s1404_s23 }
  0x50   :  { %p1411_p10 = por %p1410_p9, %p1409_p8 }
  0x52   :  { %p1412_p11 = pnand %p1411_p10, %p1405_p7 }
  0x54   :  { %1415 = shalt.err (!%p1412_p11)
}
  0x55   :  { %86 = dma.hbm_to_vmem [thread:$0]  %s1707_s7, 1024, %s81_s1, [#allocation9], %s1471_s27, %s1471_s27, %s1472_s28  }
  0x56   :  { %s1479_s18 = smov [#allocation11]   ;;  %s1416_s29 = scalar_lea.hbm %s1709_s9, 1024 }
  0x57   :  { %s94_s24 = sshll.u32 %s1479_s18, 4  ;;  %p1417_p12 = scmp.ne.s32.totalorder %s1709_s9, %s1416_s29  ;;  %s95_s24 = int_to_ptr.vmem [resolvable:$true] %s94_s24 }
  0x58   :  { %p1420_p13 = scmp.lt.u32.totalorder %s1416_s29, %s1709_s9 }
  0x5a   :  { %p1422_p0 = pnand %p1420_p13, %p1417_p12 }
  0x5c   :  { %1425 = shalt.err (!%p1422_p0)
}
  0x5d   :  { %s1426_s14 = scalar_lea.vmem %s95_s24, 1024  ;;  %p1431_p2 = scmp.lt.s32.totalorder %s95_s24, %s95_s24 }
  0x5e   :  { %p1427_p1 = scmp.ne.s32.totalorder %s95_s24, %s1426_s14  ;;  %p1432_p3 = scmp.lt.s32.totalorder %s1426_s14, %s1426_s14 }
  0x60   :  { %p1433_p4 = por %p1432_p3, %p1431_p2 }
  0x62   :  { %p1434_p5 = pnand %p1433_p4, %p1427_p1 }
  0x64   :  { %1437 = shalt.err (!%p1434_p5)
}
  0x65   :  { %100 = dma.hbm_to_vmem [thread:$0]  %s1709_s9, 1024, %s95_s24, [#allocation12], %s1471_s27, %s1471_s27, %s1472_s28  }
  0x66   :  { %1460 = dma.done.wait [#allocation3], 512  }
  0x67   :  { %1461 = vsyncadd [#allocation3], 4294966784 }
  0x68   :  { %1462 = dma.done.wait [#allocation6], 5120  }
  0x69   :  { %1463 = vsyncadd [#allocation6], 4294962176 }
  0x6a   :  { %1464 = dma.done.wait [#allocation9], 2048  }
  0x6b   :  { %1465 = vsyncadd [#allocation9], 4294965248 }
  0x6c   :  { %1466 = dma.done.wait [#allocation12], 1024  }
  0x6d   :  { %1467 = vsyncadd [#allocation12], 4294966272  ;;  %v1236_v0 = vld [vmem:[#allocation5 + $0x40] sm:$0xff]   ;;  %v1240_v4 = vld [vmem:[#allocation5 + $0x48] sm:$0xff]   ;;  %v1480_v34 = vmov 0.0   ;;  %vm1481_vm0 = vmmov 0  }
  0x6e   :  { %v1237_v1 = vld [vmem:[#allocation5 + $0xc0] sm:$0xff]   ;;  %1063 = vmatprep.subr.bf16.mxu0 %v1236_v0  ;;  %v1241_v5 = vld [vmem:[#allocation5 + $0xc8] sm:$0xff]   ;;  %v1244_v8 = vld [vmem:[#allocation5 + $0x50] sm:$0xff]   ;;  %s1482_s21 = smov [#allocation13]  }
  0x6f   :  { %v1238_v2 = vld [vmem:[#allocation5] sm:$0xff]   ;;  %1085 = vmatprep.subr.bf16.mxu1 %v1237_v1  ;;  %v1242_v6 = vld [vmem:[#allocation5 + $0x8] sm:$0xff]   ;;  %v1245_v9 = vld [vmem:[#allocation5 + $0xd0] sm:$0xff]   ;;  %s966_s23 = sshll.u32 %s1482_s21, 4  ;;  %s967_s23 = int_to_ptr.vmem [resolvable:$true] %s966_s23 }
  0x70   :  { %v1239_v3 = vld [vmem:[#allocation5 + $0x80] sm:$0xff]   ;;  %1064 = vmatpush3.bf16.msra.mxu0 %v1238_v2  ;;  %v1243_v7 = vld [vmem:[#allocation5 + $0x88] sm:$0xff]   ;;  %v1246_v10 = vld [vmem:[#allocation5 + $0x10] sm:$0xff]   ;;  %p1443_p7 = scmp.lt.s32.totalorder %s967_s23, %s967_s23 }
  0x71   :  { %1086 = vmatpush3.bf16.msra.mxu1 %v1239_v3  ;;  %1065 = vmatprep.subr.bf16.mxu0 %v1240_v4  ;;  %v1247_v11 = vld [vmem:[#allocation5 + $0x90] sm:$0xff]   ;;  %v1248_v12 = vld [vmem:[#allocation5 + $0x58] sm:$0xff]   ;;  %v1252_v16 = vld [vmem:[#allocation5 + $0x60] sm:$0xff]  }
  0x72   :  { %1087 = vmatprep.subr.bf16.mxu1 %v1241_v5  ;;  %v1249_v13 = vld [vmem:[#allocation5 + $0xd8] sm:$0xff]   ;;  %v1253_v17 = vld [vmem:[#allocation5 + $0xe0] sm:$0xff]   ;;  %v1256_v20 = vld [vmem:[#allocation5 + $0x68] sm:$0xff]  }
  0x73   :  { %v1250_v14 = vld [vmem:[#allocation5 + $0x18] sm:$0xff]   ;;  %v1254_v18 = vld [vmem:[#allocation5 + $0x20] sm:$0xff]   ;;  %v1257_v21 = vld [vmem:[#allocation5 + $0xe8] sm:$0xff]  }
  0x74   :  { %1066 = vmatpush3.bf16.msra.mxu0 %v1242_v6  ;;  %v1251_v15 = vld [vmem:[#allocation5 + $0x98] sm:$0xff]   ;;  %v1255_v19 = vld [vmem:[#allocation5 + $0xa0] sm:$0xff]   ;;  %v1258_v22 = vld [vmem:[#allocation5 + $0x28] sm:$0xff]  }
  0x75   :  { %1088 = vmatpush3.bf16.msra.mxu1 %v1243_v7  ;;  %1067 = vmatprep.subr.bf16.mxu0 %v1244_v8  ;;  %v1259_v23 = vld [vmem:[#allocation5 + $0xa8] sm:$0xff]   ;;  %v1260_v24 = vld [vmem:[#allocation5 + $0x70] sm:$0xff]   ;;  %v1264_v28 = vld [vmem:[#allocation5 + $0x78] sm:$0xff]  }
  0x76   :  { %1089 = vmatprep.subr.bf16.mxu1 %v1245_v9  ;;  %v1261_v25 = vld [vmem:[#allocation5 + $0xf0] sm:$0xff]   ;;  %v1265_v29 = vld [vmem:[#allocation5 + $0xf8] sm:$0xff]   ;;  %v1274_v37 = vld [vmem:[#allocation7] sm:$0xff]  }
  0x77   :  { %v1262_v26 = vld [vmem:[#allocation5 + $0x30] sm:$0xff]   ;;  %v1266_v30 = vld [vmem:[#allocation5 + $0x38] sm:$0xff]   ;;  %v1275_v38 = vld [vmem:[#allocation7 + $0x8] sm:$0xff]  }
  0x78   :  { %1068 = vmatpush3.bf16.msra.mxu0 %v1246_v10  ;;  %v1263_v27 = vld [vmem:[#allocation5 + $0xb0] sm:$0xff]   ;;  %v1267_v31 = vld [vmem:[#allocation5 + $0xb8] sm:$0xff]   ;;  %v1278_v41 = vld [vmem:[#allocation7 + $0x20] sm:$0xff]  }
  0x79   :  { %1090 = vmatpush3.bf16.msra.mxu1 %v1247_v11  ;;  %1069 = vmatprep.subr.bf16.mxu0 %v1248_v12  ;;  %v1268_v32 = vld [vmem:[#allocation2] ss:$16 sps:$4 sm:$0xff]   ;;  %v1270_v33 = vld [vmem:[#allocation2 + $0x4] ss:$16 sps:$4 sm:$0xff]   ;;  %v1271_v35 = vld [vmem:[#allocation2 + $0x8] ss:$16 sps:$4 sm:$0xff]  }
  0x7a   :  { %1091 = vmatprep.subr.bf16.mxu1 %v1249_v13  ;;  %v1273_v36 = vld [vmem:[#allocation2 + $0xc] ss:$16 sps:$4 sm:$0xff]   ;;  %441 = vmatprep.mubr.bf16.mxu0 %v1270_v33  ;;  %v1276_v39 = vld [vmem:[#allocation7 + $0x10] sm:$0xff]   ;;  %v1282_v45 = vld [vmem:[#allocation8] sm:$0xff]  }
  0x7b   :  { %482 = vmatprep.mubr.bf16.mxu1 %v1273_v36  ;;  %v1277_v40 = vld [vmem:[#allocation7 + $0x18] sm:$0xff]   ;;  %v1279_v42 = vld [vmem:[#allocation7 + $0x28] sm:$0xff]   ;;  %v1280_v43 = vld [vmem:[#allocation7 + $0x30] sm:$0xff]  }
  0x7c   :  { %1070 = vmatpush3.bf16.msra.mxu0 %v1250_v14  ;;  %v1281_v44 = vld [vmem:[#allocation7 + $0x38] sm:$0xff]   ;;  %v1283_v46 = vld [vmem:[#allocation8 + $0x8] sm:$0xff]   ;;  %v1284_v47 = vld [vmem:[#allocation8 + $0x10] sm:$0xff]  }
  0x7d   :  { %1092 = vmatpush3.bf16.msra.mxu1 %v1251_v15  ;;  %1071 = vmatprep.subr.bf16.mxu0 %v1252_v16  ;;  %v1285_v48 = vld [vmem:[#allocation8 + $0x18] sm:$0xff]   ;;  %v1286_v49 = vld [vmem:[#allocation8 + $0x20] sm:$0xff]   ;;  %v1287_v50 = vld [vmem:[#allocation8 + $0x28] sm:$0xff]  }
  0x7e   :  { %1093 = vmatprep.subr.bf16.mxu1 %v1253_v17  ;;  %v981_v53 = vld [vmem:[%s1702_s2] ss:$0 sm:$0xff]  ;;  %v1288_v7 = vld [vmem:[#allocation8 + $0x30] sm:$0xff]   ;;  %v1289_v8 = vld [vmem:[#allocation8 + $0x38] sm:$0xff]  }
  0x7f   :  { %v1290_v9 = vld [vmem:[#allocation10] sm:$0xff]   ;;  %v1291_v10 = vld [vmem:[#allocation10 + $0x8] sm:$0xff]   ;;  %v1292_v11 = vld [vmem:[#allocation10 + $0x10] sm:$0xff]  }
  0x80   :  { %1072 = vmatpush3.bf16.msra.mxu0 %v1254_v18  ;;  %v1293_v12 = vld [vmem:[#allocation10 + $0x18] sm:$0xff]   ;;  %v1294_v13 = vld [vmem:[#allocation10 + $0x20] sm:$0xff]   ;;  %v1295_v14 = vld [vmem:[#allocation10 + $0x28] sm:$0xff]  }
  0x81   :  { %1094 = vmatpush3.bf16.msra.mxu1 %v1255_v19  ;;  %1073 = vmatprep.subr.bf16.mxu0 %v1256_v20  ;;  %v1018_v15 = vld [vmem:[%s1704_s4] ss:$0 sm:$0xff] }
  0x82   :  { %1095 = vmatprep.subr.bf16.mxu1 %v1257_v21  ;;  %v1027_v33 = vld [vmem:[%s1706_s6] ss:$0 sm:$0xff] }
  0x84   :  { %1074 = vmatpush3.bf16.msra.mxu0 %v1258_v22 }
  0x85   :  { %1096 = vmatpush3.bf16.msra.mxu1 %v1259_v23  ;;  %1075 = vmatprep.subr.bf16.mxu0 %v1260_v24 }
  0x86   :  { %1097 = vmatprep.subr.bf16.mxu1 %v1261_v25  ;;  %v1296_v25 = vld [vmem:[#allocation10 + $0x30] sm:$0xff]  }
  0x88   :  { %1076 = vmatpush3.bf16.msra.mxu0 %v1262_v26  ;;  %v1297_v26 = vld [vmem:[#allocation10 + $0x38] sm:$0xff]  }
  0x89   :  { %1098 = vmatpush3.bf16.msra.mxu1 %v1263_v27  ;;  %1077 = vmatprep.subr.bf16.mxu0 %v1264_v28  ;;  %v1298_v27 = vld [vmem:[#allocation11] sm:$0xff]   ;;  %v1299_v28 = vld [vmem:[#allocation11 + $0x8] sm:$0xff]  }
  0x8a   :  { %1099 = vmatprep.subr.bf16.mxu1 %v1265_v29  ;;  %v1300_v29 = vld [vmem:[#allocation11 + $0x10] sm:$0xff]  }
  0x8c   :  { %1078 = vmatpush3.bf16.msra.mxu0 %v1266_v30  ;;  %v1301_v30 = vld [vmem:[#allocation11 + $0x18] sm:$0xff]  }
  0x8d   :  { %1100 = vmatpush3.bf16.msra.mxu1 %v1267_v31  ;;  %1143 = vmatprep.subr.bf16.mxu0 %v1480_v34  ;;  %v1302_v31 = vld [vmem:[#allocation11 + $0x20] sm:$0xff]  }
  0x8e   :  { %1163 = vmatprep.subr.bf16.mxu1 %v1480_v34 }
  0x8f   :  { %442 = vmatmul.mubr.bf16.vlgmr.msra.gmra.mrb[0].mxu0 %v1268_v32  ;;  %v1303_v32 = vld [vmem:[#allocation11 + $0x28] sm:$0xff]  }
  0x90   :  { %483 = vmatmul.mubr.bf16.vlgmr.msra.gmra.mrb[0].mxu1 %v1271_v35  ;;  %1144 = vmatpush3.bf16.msra.mxu0 %v1274_v37 }
  0x91   :  { %1145 = vmatprep.subr.bf16.mxu0 %v1480_v34  ;;  %1159 = vmatprep.mubr.msk.bf16.mxu0 %vm1481_vm0, %v1480_v34 }
  0x92   :  { %1179 = vmatprep.mubr.msk.bf16.mxu1 %vm1481_vm0, %v1480_v34  ;;  %1164 = vmatpush3.bf16.msra.mxu1 %v1282_v45  ;;  %v1305_v45 = vld [vmem:[#allocation11 + $0x38] sm:$0xff]  }
  0x93   :  { %1165 = vmatprep.subr.bf16.mxu1 %v1480_v34 }
  0x94   :  { %1146 = vmatpush3.bf16.msra.mxu0 %v1275_v38 }
  0x95   :  { %1147 = vmatprep.subr.bf16.mxu0 %v1480_v34 }
  0x96   :  { %1166 = vmatpush3.bf16.msra.mxu1 %v1283_v46  ;;  %v1036_v46 = vld [vmem:[%s1708_s8] ss:$0 sm:$0xff]  ;;  %s1438_s8 = scalar_lea.vmem %s967_s23, 128 }
  0x97   :  { %1167 = vmatprep.subr.bf16.mxu1 %v1480_v34  ;;  %p1439_p6 = scmp.ne.s32.totalorder %s967_s23, %s1438_s8  ;;  %p1444_p8 = scmp.lt.s32.totalorder %s1438_s8, %s1438_s8 }
  0x98   :  { %1148 = vmatpush3.bf16.msra.mxu0 %v1276_v39 }
  0x99   :  { %1149 = vmatprep.subr.bf16.mxu0 %v1480_v34  ;;  %p1445_p9 = por %p1444_p8, %p1443_p7 }
  0x9a   :  { %1168 = vmatpush3.bf16.msra.mxu1 %v1284_v47 }
  0x9b   :  { %1169 = vmatprep.subr.bf16.mxu1 %v1480_v34  ;;  %p1446_p10 = pnand %p1445_p9, %p1439_p6 }
  0x9c   :  { %1150 = vmatpush3.bf16.msra.mxu0 %v1277_v40 }
  0x9d   :  { %1151 = vmatprep.subr.bf16.mxu0 %v1480_v34 }
  0x9e   :  { %1170 = vmatpush3.bf16.msra.mxu1 %v1285_v48 }
  0x9f   :  { %1171 = vmatprep.subr.bf16.mxu1 %v1480_v34 }
  0xa0   :  { %1152 = vmatpush3.bf16.msra.mxu0 %v1278_v41 }
  0xa1   :  { %1153 = vmatprep.subr.bf16.mxu0 %v1480_v34 }
  0xa2   :  { %1172 = vmatpush3.bf16.msra.mxu1 %v1286_v49 }
  0xa3   :  { %1173 = vmatprep.subr.bf16.mxu1 %v1480_v34 }
  0xa4   :  { %1154 = vmatpush3.bf16.msra.mxu0 %v1279_v42 }
  0xa5   :  { %1155 = vmatprep.subr.bf16.mxu0 %v1480_v34 }
  0xa6   :  { %1174 = vmatpush3.bf16.msra.mxu1 %v1287_v50 }
  0xa7   :  { %1175 = vmatprep.subr.bf16.mxu1 %v1480_v34 }
  0xa8   :  { %1156 = vmatpush3.bf16.msra.mxu0 %v1280_v43 }
  0xa9   :  { %1157 = vmatprep.subr.bf16.mxu0 %v1480_v34 }
  0xaa   :  { %1176 = vmatpush3.bf16.msra.mxu1 %v1288_v7 }
  0xab   :  { %1177 = vmatprep.subr.bf16.mxu1 %v1480_v34 }
  0xac   :  { %1158 = vmatpush3.bf16.msra.mxu0 %v1281_v44  ;;  %v1304_v44 = vld [vmem:[#allocation11 + $0x30] sm:$0xff]  }
  0xad   :  { %1183 = vmatprep.subr.bf16.mxu0 %v1480_v34 }
  0xae   :  { %1178 = vmatpush3.bf16.msra.mxu1 %v1289_v8 }
  0xaf   :  { %1203 = vmatprep.subr.bf16.mxu1 %v1480_v34 }
 0x162   :  { %v1079_v51 = vpop.f32.mrb[0].mxu0 }
 0x163   :  { %v1101_v52 = vpop.f32.mrb[0].mxu1  ;;  %v1080_v54 = vpop.f32.mrb[1].mxu0 }
 0x164   :  { %v1081_v55 = vadd.f32 %v1080_v54, %v1079_v51  ;;  %v1102_v56 = vpop.f32.mrb[1].mxu1  ;;  %v1082_v57 = vpop.f32.mrb[2].mxu0 }
 0x165   :  { %v1103_v58 = vadd.f32 %v1102_v56, %v1101_v52  ;;  %v1104_v59 = vpop.f32.mrb[2].mxu1  ;;  %v1083_v60 = vpop.f32.mrb[3].mxu0 }
 0x166   :  { %v444_v61 = vadd.f32 %v1081_v55, %v981_v53  ;;  %v1084_v62 = vadd.f32 %v1083_v60, %v1082_v57  ;;  %v1105_v63 = vpop.f32.mrb[3].mxu1 }
 0x167   :  { %v1106_v0 = vadd.f32 %v1105_v63, %v1104_v59 }
 0x168   :  { %v485_v1 = vadd.f32 %v1103_v58, %v444_v61  ;;  %v447_v2 = vadd.f32 %v1084_v62, %v981_v53 }
 0x16a   :  { %v488_v3 = vadd.f32 %v1106_v0, %v447_v2  ;;  %v491_v4 = vmax.f32 %v485_v1, 0.0 }
 0x16c   :  { %v492_v5 = vmax.f32 %v488_v3, 0.0 }
 0x16e   :  { %v493_v6 = vpack.c.bf16 %v492_v5, %v491_v4 }
 0x170   :  { %1160 = vmatmul.mubr.bf16.vlgmr.msra.gmra.mrb[4].mxu0 %v493_v6 }
 0x171   :  { %1199 = vmatprep.mubr.msk.bf16.mxu0 %vm1481_vm0, %v1480_v34  ;;  %1184 = vmatpush3.bf16.msra.mxu0 %v1290_v9 }
 0x172   :  { %1185 = vmatprep.subr.bf16.mxu0 %v1480_v34 }
 0x175   :  { %1186 = vmatpush3.bf16.msra.mxu0 %v1291_v10 }
 0x176   :  { %1187 = vmatprep.subr.bf16.mxu0 %v1480_v34 }
 0x179   :  { %1188 = vmatpush3.bf16.msra.mxu0 %v1292_v11 }
 0x17a   :  { %1189 = vmatprep.subr.bf16.mxu0 %v1480_v34 }
 0x17d   :  { %1190 = vmatpush3.bf16.msra.mxu0 %v1293_v12 }
 0x17e   :  { %1191 = vmatprep.subr.bf16.mxu0 %v1480_v34 }
 0x181   :  { %1192 = vmatpush3.bf16.msra.mxu0 %v1294_v13 }
 0x182   :  { %1193 = vmatprep.subr.bf16.mxu0 %v1480_v34 }
 0x185   :  { %1194 = vmatpush3.bf16.msra.mxu0 %v1295_v14 }
 0x186   :  { %1195 = vmatprep.subr.bf16.mxu0 %v1480_v34 }
 0x189   :  { %1196 = vmatpush3.bf16.msra.mxu0 %v1296_v25 }
 0x18a   :  { %1197 = vmatprep.subr.bf16.mxu0 %v1480_v34 }
 0x18d   :  { %1198 = vmatpush3.bf16.msra.mxu0 %v1297_v26 }
 0x243   :  { %v599_v16 = vpop.f32.mrb[4].mxu0 }
 0x244   :  { %v600_v17 = vadd.f32 %v1018_v15, %v599_v16  ;;  %v1161_v18 = vpop.f32.mrb[5].mxu0 }
 0x245   :  { %v602_v19 = vpop.f32.mrb[6].mxu0 }
 0x246   :  { %v603_v20 = vadd.f32 %v1018_v15, %v602_v19  ;;  %v1162_v21 = vpop.f32.mrb[7].mxu0  ;;  %v606_v22 = vmax.f32 %v600_v17, 0.0 }
 0x248   :  { %v607_v23 = vmax.f32 %v603_v20, 0.0 }
 0x24a   :  { %v608_v24 = vpack.c.bf16 %v607_v23, %v606_v22 }
 0x24c   :  { %1180 = vmatmul.mubr.bf16.vlgmr.msra.gmra.mrb[4].mxu1 %v608_v24 }
 0x24d   :  { %1219 = vmatprep.mubr.msk.bf16.mxu1 %vm1481_vm0, %v1480_v34  ;;  %1204 = vmatpush3.bf16.msra.mxu1 %v1298_v27 }
 0x24e   :  { %1205 = vmatprep.subr.bf16.mxu1 %v1480_v34 }
 0x251   :  { %1206 = vmatpush3.bf16.msra.mxu1 %v1299_v28 }
 0x252   :  { %1207 = vmatprep.subr.bf16.mxu1 %v1480_v34 }
 0x255   :  { %1208 = vmatpush3.bf16.msra.mxu1 %v1300_v29 }
 0x256   :  { %1209 = vmatprep.subr.bf16.mxu1 %v1480_v34 }
 0x259   :  { %1210 = vmatpush3.bf16.msra.mxu1 %v1301_v30 }
 0x25a   :  { %1211 = vmatprep.subr.bf16.mxu1 %v1480_v34 }
 0x25d   :  { %1212 = vmatpush3.bf16.msra.mxu1 %v1302_v31 }
 0x25e   :  { %1213 = vmatprep.subr.bf16.mxu1 %v1480_v34 }
 0x261   :  { %1214 = vmatpush3.bf16.msra.mxu1 %v1303_v32 }
 0x262   :  { %1215 = vmatprep.subr.bf16.mxu1 %v1480_v34 }
 0x265   :  { %1216 = vmatpush3.bf16.msra.mxu1 %v1304_v44 }
 0x266   :  { %1217 = vmatprep.subr.bf16.mxu1 %v1480_v34  ;;  %v1045_v34 = vld [vmem:[%s1710_s10] ss:$0 sm:$0xff] }
 0x269   :  { %1218 = vmatpush3.bf16.msra.mxu1 %v1305_v45 }
 0x31f   :  { %v714_v35 = vpop.f32.mrb[4].mxu1 }
 0x320   :  { %v715_v36 = vadd.f32 %v1027_v33, %v714_v35  ;;  %v1181_v37 = vpop.f32.mrb[5].mxu1 }
 0x321   :  { %v717_v38 = vpop.f32.mrb[6].mxu1 }
 0x322   :  { %v718_v39 = vadd.f32 %v1027_v33, %v717_v38  ;;  %v1182_v40 = vpop.f32.mrb[7].mxu1  ;;  %v721_v41 = vmax.f32 %v715_v36, 0.0 }
 0x324   :  { %v722_v42 = vmax.f32 %v718_v39, 0.0 }
 0x326   :  { %v723_v43 = vpack.c.bf16 %v722_v42, %v721_v41 }
 0x328   :  { %1200 = vmatmul.mubr.bf16.vlgmr.msra.gmra.mrb[8].mxu0 %v723_v43 }
 0x3fb   :  { %v829_v47 = vpop.f32.mrb[8].mxu0 }
 0x3fc   :  { %v830_v48 = vadd.f32 %v1036_v46, %v829_v47  ;;  %v1201_v49 = vpop.f32.mrb[9].mxu0 }
 0x3fd   :  { %v832_v50 = vpop.f32.mrb[10].mxu0 }
 0x3fe   :  { %v833_v51 = vadd.f32 %v1036_v46, %v832_v50  ;;  %v1202_v52 = vpop.f32.mrb[11].mxu0  ;;  %v836_v53 = vmax.f32 %v830_v48, 0.0 }
 0x400   :  { %v837_v54 = vmax.f32 %v833_v51, 0.0 }
 0x402   :  { %v838_v55 = vpack.c.bf16 %v837_v54, %v836_v53 }
 0x404   :  { %1220 = vmatmul.mubr.bf16.vlgmr.msra.gmra.mrb[8].mxu1 %v838_v55 }
 0x4d7   :  { %v944_v56 = vpop.f32.mrb[8].mxu1 }
 0x4d8   :  { %v1221_v57 = vpop.f32.mrb[9].mxu1  ;;  %v945_v59 = vadd.f32 %v1045_v34, %v944_v56 }
 0x4d9   :  { %v947_v58 = vpop.f32.mrb[10].mxu1 }
 0x4da   :  { %v948_v60 = vadd.f32 %v1045_v34, %v947_v58  ;;  %v1222_v61 = vpop.f32.mrb[11].mxu1 }
 0x4dc   :  { %v1061_v62 = vpack.c.bf16 %v948_v60, %v945_v59 }
 0x4de   :  { %1062 = vst [vmem:[#allocation13] sm:$0xff] %v1061_v62  }
 0x4df   :  { %1449 = shalt.err (!%p1446_p10)
}
 0x4e0   :  { %s1450_s22 = scalar_lea.hbm %s1711_s11, 128 }
 0x4e1   :  { %p1451_p11 = scmp.ne.s32.totalorder %s1711_s11, %s1450_s22  ;;  %p1454_p12 = scmp.lt.u32.totalorder %s1450_s22, %s1711_s11 }
 0x4e3   :  { %p1456_p13 = pnand %p1454_p12, %p1451_p11 }
 0x4e5   :  { %1459 = shalt.err (!%p1456_p13)
}
 0x4e6   :  { %972 = dma.vmem_to_hbm [thread:$0]  %s967_s23, 128, %s1711_s11, [#allocation4], %s1471_s27, %s1471_s27, %s1472_s28  }
 0x4e7   :  { %1468 = dma.done.wait [#allocation4], 128  }
 0x4e8   :  { %1469 = vsyncadd [#allocation4], 4294967168 }
 0x4e9   :  { %976 = vsyncpa [#allocation3], 1 }
 0x4ea   :  { %977 = vsyncpa [#allocation6], 1 }
 0x4eb   :  { %978 = vsyncpa [#allocation9], 1 }
 0x4ec   :  { %979 = vsyncpa [#allocation12], 1 }
 0x4ed   :  { %980 = vsyncpa [#allocation4], 1 }

</bundles_post_ra>
